<compile_context>
chip_gen: v5e
topology: v5e:2x2
jax: 0.10.0
libtpu: 0.0.40
codegen_flags: <defaults>
</compile_context>

<pallas_src>
import numpy as np
import jax
import jax.numpy as jnp
from jax import lax
from jax.experimental import pallas as pl
from jax.experimental.pallas import tpu as pltpu


# ------------------------------- helpers ------------------------------------
def _round_up(a, b):
    return (a + b - 1) // b * b


def _sublane_granule(dtype):
    """Second-minor tiling granule: 8 rows for 4-byte, 16 for 2-byte, 32 for 1-byte."""
    return max(8, 32 // np.dtype(dtype).itemsize)


def _vmem_limit_bytes():
    """Generation-aware VMEM limit: ~80% of physical per-core VMEM (headroom on v7x)."""
    cap = 128 * 1024 * 1024            # v5e / v6e physical VMEM per TensorCore
    try:
        cap = int(getattr(pltpu.get_tpu_info(), "vmem_capacity_bytes", cap))
    except Exception:
        pass
    return max(32 * 1024 * 1024, int(cap * 0.8))


def _pick_row_tile(H, W8, target=2048):
    """Largest row tile TR (divisor of H) with TR*W8 <= target rows."""
    best = 1
    for tr in range(1, H + 1):
        if H % tr == 0 and tr * W8 <= target:
            best = tr
    return best


# --------------------------- tiled matmul kernel ------------------------------
def _matmul_kernel(scale_ref, x_ref, w_ref, o_ref, acc_ref):
    # x_ref: (tm, tk); w_ref: (tn, tk) (trans_b on the MXU); o_ref: (tm, tn)
    k = pl.program_id(2)
    prod = lax.dot_general(
        x_ref[...], w_ref[...],
        dimension_numbers=(((1,), (1,)), ((), ())),     # contract x dim1 with w dim1
        preferred_element_type=jnp.float32)

    @pl.when(k == 0)
    def _():
        acc_ref[...] = prod                             # assign: no zeros init / first RMW

    @pl.when(k != 0)
    def _():
        acc_ref[...] += prod

    @pl.when(k == pl.num_programs(2) - 1)
    def _():
        o_ref[...] = (acc_ref[...] * scale_ref[0]).astype(o_ref.dtype)


def _mp_matmul(x, w, scale_arr):
    """out = (x @ w.T) * scale, x:(M,K), w:(Nout,K)."""
    M, K = x.shape
    Nout, K_w = w.shape
    assert K == K_w
    g = _sublane_granule(x.dtype)

    tm = 256 if M >= 256 else _round_up(M, g)
    tn = 512 if Nout >= 512 else (256 if Nout >= 256 else 128)
    tk = 1024 if K >= 1024 else (512 if K >= 512 else (256 if K >= 256 else 128))

    M_p, K_p, N_p = _round_up(M, tm), _round_up(K, tk), _round_up(Nout, tn)
    x_p = x if (M_p == M and K_p == K) else jnp.pad(x, ((0, M_p - M), (0, K_p - K)))
    w_p = w if (N_p == Nout and K_p == K) else jnp.pad(w, ((0, N_p - Nout), (0, K_p - K)))

    grid = (M_p // tm, N_p // tn, K_p // tk)
    out = pl.pallas_call(
        _matmul_kernel,
        out_shape=jax.ShapeDtypeStruct((M_p, N_p), x.dtype),
        grid=grid,
        in_specs=[
            pl.BlockSpec(memory_space=pltpu.MemorySpace.SMEM),        # scale scalar
            pl.BlockSpec((tm, tk), lambda i, j, k: (i, k)),
            pl.BlockSpec((tn, tk), lambda i, j, k: (j, k)),
        ],
        out_specs=pl.BlockSpec((tm, tn), lambda i, j, k: (i, j)),
        scratch_shapes=[pltpu.VMEM((tm, tn), jnp.float32)],
        compiler_params=pltpu.CompilerParams(
            dimension_semantics=("parallel", "parallel", "arbitrary"),
            vmem_limit_bytes=_vmem_limit_bytes()),
    )(scale_arr, x_p, w_p)
    return out[:M, :Nout]


# --------------------------- conv2d (4-D weight) ------------------------------
def _make_conv_kernel(W8, TR, TN, kh, align):
    def conv_kernel(scale_ref, x_ref, w_ref, o_ref, acc_ref):
        # scale_ref: (1,) f32 SMEM scalar
        # x_ref:  (1, Hp*W8, kw*Cin)  flat dx-shifted activations (resident per batch)
        # w_ref:  (kh, kw*Cin, TN)    per-dy weight slabs for this Cout tile
        # o_ref:  (1, TR*W8, TN)      lane-dense output tile
        # acc_ref:(TR*W8, TN) f32     accumulator
        r0 = pl.program_id(2) * TR                      # first output row of this tile
        for dy in range(kh):                            # kh <= 3: cheap static unroll
            off = pl.multiple_of((r0 + dy) * W8, align)
            # aligned contiguous slab: no sublane shift, no reshape, no relayout
            lhs = x_ref[0, pl.ds(off, TR * W8), :]
            prod = jnp.dot(lhs, w_ref[dy], preferred_element_type=jnp.float32)
            if dy == 0:
                acc_ref[...] = prod                     # first tap assigns
            else:
                acc_ref[...] += prod
        res = (acc_ref[...] * scale_ref[0]).astype(o_ref.dtype)
        o_ref[...] = res.reshape(1, TR * W8, TN)

    return conv_kernel


def _mp_conv2d_direct(x_nchw, w_oihw, scale_arr):
    """Direct conv path: image resident per batch, kh matmuls per output tile.

    Returns None if the resident image would blow the VMEM budget (caller
    falls back to the im2col path)."""
    N, Cin, H, W = x_nchw.shape
    Cout, _, kh, kw = w_oihw.shape
    p = kw // 2
    dtype = x_nchw.dtype
    g = _sublane_granule(dtype)
    W8 = _round_up(W, g)                  # padded row width keeps flat-row offsets aligned
    Hp = H + 2 * p
    K = kw * Cin

    Cout_p = _round_up(Cout, 128)         # lane-dense output tiles (no masked stores)
    TN = 256 if Cout_p % 256 == 0 else 128
    TR = _pick_row_tile(H, W8)

    # VMEM feasibility of keeping the whole dx-shifted image resident per batch.
    item = np.dtype(dtype).itemsize
    K_l = _round_up(K, 128)
    need = (2 * Hp * W8 * K_l * item      # image (double-buffered by the pipeline)
            + 2 * kh * K_l * TN * item    # weight tiles
            + 2 * TR * W8 * TN * item     # output tiles
            + TR * W8 * TN * 4)           # f32 accumulator
    if need > int(0.7 * _vmem_limit_bytes()):
        return None

    # Wrapper-side layout plumbing (XLA): NCHW -> padded NHWC -> kw dx-shifted
    # copies concatenated on channels -> flat (Hp*W8, kw*Cin) rows.
    # TODO(synk): keep activations NHWC end-to-end in the surrounding model and
    # fold padding / shifted-copy construction into the kernel (halo DMA) to
    # remove these extra HBM passes for narrow, HBM-bound layers.
    x_nhwc = jnp.transpose(x_nchw, (0, 2, 3, 1))
    x_pad = jnp.pad(x_nhwc, ((0, 0), (p, p), (p, p + (W8 - W)), (0, 0)))
    x_cols = jnp.concatenate([x_pad[:, :, dx:dx + W8, :] for dx in range(kw)], axis=-1)
    x_cols = x_cols.reshape(N, Hp * W8, K)

    w_t = jnp.transpose(w_oihw, (2, 3, 1, 0)).reshape(kh, K, Cout)   # (kh, kw*Cin, Cout)
    if Cout_p != Cout:
        w_t = jnp.pad(w_t, ((0, 0), (0, 0), (0, Cout_p - Cout)))

    grid = (N, Cout_p // TN, H // TR)     # ct before rt: weight streamed once per batch
    kernel = _make_conv_kernel(W8, TR, TN, kh, g)
    out_flat = pl.pallas_call(
        kernel,
        out_shape=jax.ShapeDtypeStruct((N, H * W8, Cout_p), dtype),
        grid=grid,
        in_specs=[
            pl.BlockSpec(memory_space=pltpu.MemorySpace.SMEM),                 # scale
            pl.BlockSpec((1, Hp * W8, K), lambda n, ct, rt: (n, 0, 0)),        # image
            pl.BlockSpec((kh, K, TN), lambda n, ct, rt: (0, 0, ct)),           # weight
        ],
        out_specs=pl.BlockSpec((1, TR * W8, TN), lambda n, ct, rt: (n, rt, ct)),
        scratch_shapes=[pltpu.VMEM((TR * W8, TN), jnp.float32)],
        compiler_params=pltpu.CompilerParams(
            dimension_semantics=("parallel", "parallel", "parallel"),
            vmem_limit_bytes=_vmem_limit_bytes()),
    )(scale_arr, x_cols, w_t)

    out = out_flat.reshape(N, H, W8, Cout_p)[:, :, :W, :Cout]
    return jnp.transpose(out, (0, 3, 1, 2))              # back to NCHW


def _mp_conv2d_im2col(x_nchw, w_oihw, scale_arr):
    """Fallback for feature maps too large to keep resident in VMEM: full im2col
    (K = kh*kw*Cin) + the tiled matmul kernel.  Costs kh*kw x activation HBM
    traffic in the wrapper but bounds kernel VMEM and keeps the contraction wide."""
    N, Cin, H, W = x_nchw.shape
    Cout, _, kh, kw = w_oihw.shape
    p = kw // 2
    x_nhwc = jnp.transpose(x_nchw, (0, 2, 3, 1))
    x_pad = jnp.pad(x_nhwc, ((0, 0), (p, p), (p, p), (0, 0)))
    cols = jnp.concatenate(
        [x_pad[:, dy:dy + H, dx:dx + W, :] for dy in range(kh) for dx in range(kw)],
        axis=-1)                                          # (N, H, W, kh*kw*Cin)
    x_col = cols.reshape(N * H * W, kh * kw * Cin)
    w_col = jnp.transpose(w_oihw, (0, 2, 3, 1)).reshape(Cout, kh * kw * Cin)
    out = _mp_matmul(x_col, w_col, scale_arr)             # (N*H*W, Cout)
    return jnp.transpose(out.reshape(N, H, W, Cout), (0, 3, 1, 2))


def _mp_conv2d(x_nchw, w_oihw, scale_arr, conv_impl="auto"):
    Cout, Cin_w, kh, kw = w_oihw.shape
    assert x_nchw.shape[1] == Cin_w
    # TODO(synk): even / non-square kernels need asymmetric padding handling;
    # EDM2 only uses odd square kernels (1x1 / 3x3).
    assert kh == kw and kh % 2 == 1
    if conv_impl in ("auto", "direct"):
        out = _mp_conv2d_direct(x_nchw, w_oihw, scale_arr)
        if out is not None:
            return out
        if conv_impl == "direct":
            raise ValueError("direct conv path does not fit the VMEM budget")
    return _mp_conv2d_im2col(x_nchw, w_oihw, scale_arr)


# ------------------------------- module API -----------------------------------
def mpconv_forward(x, weight, gain=1.0, *, conv_impl="auto"):
    """Equivalent of MPConv.forward(x, gain)."""
    weight_gain = float(np.sqrt(np.prod(weight.shape[1:])))   # sqrt(weight[0].numel())
    # Runtime scalar (works for python floats and traced/learnable gain).
    scale_arr = (jnp.asarray(gain, dtype=jnp.float32) / weight_gain).reshape(1)
    if weight.ndim == 2:
        lead = x.shape[:-1]
        out = _mp_matmul(x.reshape(-1, x.shape[-1]), weight, scale_arr)
        return out.reshape(*lead, weight.shape[0])
    assert weight.ndim == 4
    return _mp_conv2d(x, weight, scale_arr, conv_impl=conv_impl)


# --------------------------------- main ----------------------------------------
if __name__ == "__main__":
    key = jax.random.PRNGKey(0)
    k_xc, k_wc, k_x1, k_w1, k_xl, k_wl = jax.random.split(key, 6)

    # ---- conv path (3x3): batch=2, in_channels=4, out_channels=8, 16x16 ----
    N, Cin, H, W = 2, 4, 16, 16
    Cout, kh, kw = 8, 3, 3
    x_conv = jax.random.normal(k_xc, (N, Cin, H, W), dtype=jnp.float32)
    w_conv = jax.random.normal(k_wc, (Cout, Cin, kh, kw), dtype=jnp.float32)
    gain = 1.5
    scale_c = gain / np.sqrt(np.prod(w_conv.shape[1:]))
    ref_conv = lax.conv_general_dilated(
        x_conv, w_conv * scale_c, window_strides=(1, 1),
        padding=((kh // 2, kh // 2), (kw // 2, kw // 2)),
        dimension_numbers=("NCHW", "OIHW", "NCHW"))

    out_conv = jax.block_until_ready(mpconv_forward(x_conv, w_conv, gain=gain))
    np.testing.assert_allclose(np.asarray(out_conv), np.asarray(ref_conv),
                               rtol=1e-4, atol=1e-4)

    # same conv through the im2col fallback path (exercised explicitly)
    out_conv2 = jax.block_until_ready(
        mpconv_forward(x_conv, w_conv, gain=gain, conv_impl="im2col"))
    np.testing.assert_allclose(np.asarray(out_conv2), np.asarray(ref_conv),
                               rtol=1e-4, atol=1e-4)

    # ---- conv path (1x1): batch=2, in_channels=32, out_channels=16, 16x16 ----
    x_1 = jax.random.normal(k_x1, (2, 32, 16, 16), dtype=jnp.float32)
    w_1 = jax.random.normal(k_w1, (16, 32, 1, 1), dtype=jnp.float32)
    ref_1 = lax.conv_general_dilated(
        x_1, w_1 * (1.0 / np.sqrt(32.0)), window_strides=(1, 1),
        padding=((0, 0), (0, 0)), dimension_numbers=("NCHW", "OIHW", "NCHW"))
    out_1 = jax.block_until_ready(mpconv_forward(x_1, w_1, gain=1.0))
    np.testing.assert_allclose(np.asarray(out_1), np.asarray(ref_1),
                               rtol=1e-4, atol=1e-4)

    # ---- linear path: seq=8, hidden=32 -> out=16 ----
    M, Hin, Hout = 8, 32, 16
    x_lin = jax.random.normal(k_xl, (M, Hin), dtype=jnp.float32)
    w_lin = jax.random.normal(k_wl, (Hout, Hin), dtype=jnp.float32)
    ref_lin = x_lin @ (w_lin * (1.0 / np.sqrt(Hin))).T
    out_lin = jax.block_until_ready(mpconv_forward(x_lin, w_lin, gain=1.0))
    np.testing.assert_allclose(np.asarray(out_lin), np.asarray(ref_lin),
                               rtol=1e-4, atol=1e-4)

    print("KERNEL_OK")
</pallas_src>

<mosaic_0001>
module attributes {stable_mosaic.version = 11 : i64} {
  func.func @conv_kernel(%arg0: i32, %arg1: i32, %arg2: i32, %arg3: memref<1xf32, #tpu.memory_space<smem>>, %arg4: memref<1x288x12xf32, #tpu.memory_space<vmem>>, %arg5: memref<3x12x128xf32, #tpu.memory_space<vmem>>, %arg6: memref<1x256x128xf32, #tpu.memory_space<vmem>>, %arg7: memref<256x128xf32, #tpu.memory_space<vmem>>) attributes {dimension_semantics = [#tpu.dimension_semantics<parallel>, #tpu.dimension_semantics<parallel>, #tpu.dimension_semantics<parallel>], iteration_bounds = array<i64: 2, 1, 1>, scalar_prefetch = 0 : i64, scratch_operands = 1 : i64, tpu.core_type = #tpu.core_type<tc>, window_params = [{transform_indices = @transform_0, window_bounds = array<i64: 1>}, {transform_indices = @transform_1, window_bounds = array<i64: 1, 288, 12>}, {transform_indices = @transform_2, window_bounds = array<i64: 3, 12, 128>}, {transform_indices = @transform_3, window_bounds = array<i64: 1, 256, 128>}]} {
    %c16_i32 = arith.constant 16 : i32
    %0 = arith.muli %arg2, %c16_i32 : i32
    %c0_i32 = arith.constant 0 : i32
    %1 = arith.addi %0, %c0_i32 : i32
    %c16_i32_0 = arith.constant 16 : i32
    %2 = arith.muli %1, %c16_i32_0 : i32
    %3 = tpu.assume_multiple %2, 8 : i32
    %c0 = arith.constant 0 : index
    %4 = arith.index_cast %3 : i32 to index
    %c0_1 = arith.constant 0 : index
    %5 = vector.load %arg4[%c0, %4, %c0_1] : memref<1x288x12xf32, #tpu.memory_space<vmem>>, vector<1x256x12xf32>
    %6 = vector.shape_cast %5 : vector<1x256x12xf32> to vector<256x12xf32>
    %c0_2 = arith.constant 0 : index
    %c0_3 = arith.constant 0 : index
    %c0_4 = arith.constant 0 : index
    %7 = vector.load %arg5[%c0_2, %c0_3, %c0_4] : memref<3x12x128xf32, #tpu.memory_space<vmem>>, vector<1x12x128xf32>
    %8 = vector.shape_cast %7 : vector<1x12x128xf32> to vector<12x128xf32>
    %cst = arith.constant dense<0.000000e+00> : vector<256x128xf32>
    %9 = tpu.matmul %6, %8, %cst {dimension_numbers = #tpu.dot_dimension_numbers<[1], [0], [0], [1], [0, 0, 1, 1], [], []>} : vector<256x12xf32>, vector<12x128xf32>, vector<256x128xf32> -> vector<256x128xf32>
    %c0_5 = arith.constant 0 : index
    %c0_6 = arith.constant 0 : index
    %10 = vector.load %arg7[%c0_5, %c0_6] : memref<256x128xf32, #tpu.memory_space<vmem>>, vector<256x128xf32>
    tpu.vector_store %arg7[%c0_5, %c0_6], %9 {strides = array<i32>} : memref<256x128xf32, #tpu.memory_space<vmem>>, vector<256x128xf32>,
    %c1_i32 = arith.constant 1 : i32
    %11 = arith.addi %0, %c1_i32 : i32
    %c16_i32_7 = arith.constant 16 : i32
    %12 = arith.muli %11, %c16_i32_7 : i32
    %13 = tpu.assume_multiple %12, 8 : i32
    %c0_8 = arith.constant 0 : index
    %14 = arith.index_cast %13 : i32 to index
    %c0_9 = arith.constant 0 : index
    %15 = vector.load %arg4[%c0_8, %14, %c0_9] : memref<1x288x12xf32, #tpu.memory_space<vmem>>, vector<1x256x12xf32>
    %16 = vector.shape_cast %15 : vector<1x256x12xf32> to vector<256x12xf32>
    %c1 = arith.constant 1 : index
    %c0_10 = arith.constant 0 : index
    %c0_11 = arith.constant 0 : index
    %17 = vector.load %arg5[%c1, %c0_10, %c0_11] : memref<3x12x128xf32, #tpu.memory_space<vmem>>, vector<1x12x128xf32>
    %18 = vector.shape_cast %17 : vector<1x12x128xf32> to vector<12x128xf32>
    %cst_12 = arith.constant dense<0.000000e+00> : vector<256x128xf32>
    %19 = tpu.matmul %16, %18, %cst_12 {dimension_numbers = #tpu.dot_dimension_numbers<[1], [0], [0], [1], [0, 0, 1, 1], [], []>} : vector<256x12xf32>, vector<12x128xf32>, vector<256x128xf32> -> vector<256x128xf32>
    %c0_13 = arith.constant 0 : index
    %c0_14 = arith.constant 0 : index
    %20 = vector.load %arg7[%c0_13, %c0_14] : memref<256x128xf32, #tpu.memory_space<vmem>>, vector<256x128xf32>
    %21 = arith.addf %20, %19 : vector<256x128xf32>
    %c0_15 = arith.constant 0 : index
    %c0_16 = arith.constant 0 : index
    %22 = vector.load %arg7[%c0_15, %c0_16] : memref<256x128xf32, #tpu.memory_space<vmem>>, vector<256x128xf32>
    tpu.vector_store %arg7[%c0_15, %c0_16], %21 {strides = array<i32>} : memref<256x128xf32, #tpu.memory_space<vmem>>, vector<256x128xf32>,
    %c2_i32 = arith.constant 2 : i32
    %23 = arith.addi %0, %c2_i32 : i32
    %c16_i32_17 = arith.constant 16 : i32
    %24 = arith.muli %23, %c16_i32_17 : i32
    %25 = tpu.assume_multiple %24, 8 : i32
    %c0_18 = arith.constant 0 : index
    %26 = arith.index_cast %25 : i32 to index
    %c0_19 = arith.constant 0 : index
    %27 = vector.load %arg4[%c0_18, %26, %c0_19] : memref<1x288x12xf32, #tpu.memory_space<vmem>>, vector<1x256x12xf32>
    %28 = vector.shape_cast %27 : vector<1x256x12xf32> to vector<256x12xf32>
    %c2 = arith.constant 2 : index
    %c0_20 = arith.constant 0 : index
    %c0_21 = arith.constant 0 : index
    %29 = vector.load %arg5[%c2, %c0_20, %c0_21] : memref<3x12x128xf32, #tpu.memory_space<vmem>>, vector<1x12x128xf32>
    %30 = vector.shape_cast %29 : vector<1x12x128xf32> to vector<12x128xf32>
    %cst_22 = arith.constant dense<0.000000e+00> : vector<256x128xf32>
    %31 = tpu.matmul %28, %30, %cst_22 {dimension_numbers = #tpu.dot_dimension_numbers<[1], [0], [0], [1], [0, 0, 1, 1], [], []>} : vector<256x12xf32>, vector<12x128xf32>, vector<256x128xf32> -> vector<256x128xf32>
    %c0_23 = arith.constant 0 : index
    %c0_24 = arith.constant 0 : index
    %32 = vector.load %arg7[%c0_23, %c0_24] : memref<256x128xf32, #tpu.memory_space<vmem>>, vector<256x128xf32>
    %33 = arith.addf %32, %31 : vector<256x128xf32>
    %c0_25 = arith.constant 0 : index
    %c0_26 = arith.constant 0 : index
    %34 = vector.load %arg7[%c0_25, %c0_26] : memref<256x128xf32, #tpu.memory_space<vmem>>, vector<256x128xf32>
    tpu.vector_store %arg7[%c0_25, %c0_26], %33 {strides = array<i32>} : memref<256x128xf32, #tpu.memory_space<vmem>>, vector<256x128xf32>,
    %c0_27 = arith.constant 0 : index
    %c0_28 = arith.constant 0 : index
    %35 = vector.load %arg7[%c0_27, %c0_28] : memref<256x128xf32, #tpu.memory_space<vmem>>, vector<256x128xf32>
    %c0_29 = arith.constant 0 : index
    %36 = memref.load %arg3[%c0_29] : memref<1xf32, #tpu.memory_space<smem>>
    %37 = vector.broadcast %36 : f32 to vector<256x128xf32>
    %38 = arith.mulf %35, %37 : vector<256x128xf32>
    %39 = vector.shape_cast %38 : vector<256x128xf32> to vector<1x256x128xf32>
    %c0_30 = arith.constant 0 : index
    %c0_31 = arith.constant 0 : index
    %c0_32 = arith.constant 0 : index
    %40 = vector.load %arg6[%c0_30, %c0_31, %c0_32] : memref<1x256x128xf32, #tpu.memory_space<vmem>>, vector<1x256x128xf32>
    tpu.vector_store %arg6[%c0_30, %c0_31, %c0_32], %39 {strides = array<i32>} : memref<1x256x128xf32, #tpu.memory_space<vmem>>, vector<1x256x128xf32>,
    return
  }
  func.func @transform_0(%arg0: i32, %arg1: i32, %arg2: i32) -> i32 {
    %c0_i32 = arith.constant 0 : i32
    %c0_i32_0 = arith.constant 0 : i32
    return %c0_i32 : i32
  }
  func.func @transform_1(%arg0: i32, %arg1: i32, %arg2: i32) -> (i32, i32, i32) {
    %c0_i32 = arith.constant 0 : i32
    %c0_i32_0 = arith.constant 0 : i32
    %c0_i32_1 = arith.constant 0 : i32
    return %arg0, %c0_i32, %c0_i32_0 : i32, i32, i32
  }
  func.func @transform_2(%arg0: i32, %arg1: i32, %arg2: i32) -> (i32, i32, i32) {
    %c0_i32 = arith.constant 0 : i32
    %c0_i32_0 = arith.constant 0 : i32
    %c0_i32_1 = arith.constant 0 : i32
    return %c0_i32, %c0_i32_0, %arg1 : i32, i32, i32
  }
  func.func @transform_3(%arg0: i32, %arg1: i32, %arg2: i32) -> (i32, i32, i32) {
    %c0_i32 = arith.constant 0 : i32
    return %arg0, %arg2, %arg1 : i32, i32, i32
  }
}

</mosaic_0001>

<bundles_post_ra>
// kernel: tpu_custom_call.1
= control target key start
LH: loop header
LB: loop body
LE: loop exit
PB: predicated region body
PF: predicated region fallthrough
CT: control target
= control target key end

     0   :  { %s2179_s0 = inlined_call_operand.<no memory space> [shape: f32[1], index: 0, kind: input, shape index: {}]   ;;  %s2180_s1 = inlined_call_operand.vmem [shape: f32[2,288,12], index: 1, kind: input, shape index: {}]   ;;  %s2181_s2 = inlined_call_operand.vmem [shape: f32[3,12,128], index: 2, kind: input, shape index: {}]   ;;  %s2182_s3 = inlined_call_operand.hbm [shape: f32[2,256,128], index: 3, kind: output, shape index: {}]  }
   0x1   :  { %8 = sst [smem:[#allocation3]] %s2179_s0 }
   0x2   :  { %9 = vsyncpa [#allocation5], 0 }
   0x3   :  { %11 = vsyncpa [#allocation5 + $0x1], 0  ;;  %s1755_s14 = smov 0   ;;  %s1757_s15 = smov 0  }
   0x4   :  { %s1759_s16 = smov 0   ;;  %s1761_s17 = smov 0  }
   0x5   :  { %s1763_s18 = smov 0   ;;  %s1765_s19 = smov 0  }
   0x6 LB: > { %s1405_s0 = sadd.s32 4294967295, %s1728_s19   ;;  %s1406_s20 = sadd.s32 4294967294, %s1728_s19   ;;  %s1728_s19 = sphi %s1765_s19, %s17_s19   ;;  %s1724_s18 = sphi %s1763_s18, %s2189_s18   ;;  %s1720_s17 = sphi %s1761_s17, %s2188_s17   ;;  %s1716_s16 = sphi %s1759_s16, %s2187_s16   ;;  %s1712_s15 = sphi %s1757_s15, %s2186_s15   ;;  %s1708_s14 = sphi %s1755_s14, %s2185_s14  }
   0x7   : > { %s36_s21 = sadd.s32 1, %s1724_s18  ;;  %s120_s22 = sadd.s32 1, %s1716_s16 }
   0x8   : > { %p38_p0 = scmp.ge.s32.totalorder %s36_s21, 2  ;;  %p130_p1 = scmp.ne.s32.totalorder %s1716_s16, %s1712_s15 }
   0x9   : > { %p131_p2 = scmp.eq.s32.totalorder %s1405_s0, 1  ;;  %p136_p3 = scmp.ne.s32.totalorder %s1712_s15, %s1708_s14 }
   0xa   : > { %s2191_s21 = smov (%p38_p0, %s36_s21), 0  ;;  %p137_p5 = scmp.eq.s32.totalorder %s1406_s20, 1 }
   0xb   : > { %p1795_p4 = por %p131_p2, %p130_p1  ;;  %s113_s24 = ssub.s32 %s1724_s18, %s2191_s21 }
   0xc   : > { %p1410_p6 = scmp.ge.s32.totalorder %s1728_s19, 1  ;;  %p118_p7 = scmp.eq.s32.totalorder %s113_s24, 0 }
   0xd   : > { %p1802_p8 = por %p137_p5, %p136_p3  ;;  %p173_p9 = scmp.lt.s32.totalorder %s1728_s19, 3 }
   0xe   : > { %s1808_s26 = scalar_select %p118_p7, %s1716_s16, %s120_s22  }
   0xf   : > { %p174_p10 = pnand %p1410_p6, %p173_p9 }
  0x10   : > { %p201_p11 = scmp.lt.s32.totalorder (!%p174_p10), %s1720_s17, 1  ;;  %s1218_s24 = sld [smem:[#allocation3]] (!%p174_p10) }
  0x11   : > { %177 = sbr.rel (%p174_p10) target bundleno = 355 (0x163), region = 32  ;;  %s198_s27 = sand.u32 (!%p174_p10), 1, %s1712_s15  }
  0x12   : > { %s1411_s28 = sshll.u32 (!%p174_p10), %s198_s27, 8  ;;  %s1585_s30 = sshll.u32 (!%p174_p10), %s1720_s17, 8 }
  0x13   : > { %s1986_s29 = scalar_lea.vmem (!%p174_p10), [#allocation4], %s1411_s28  ;;  %s1299_s6 = scalar_lea.hbm (!%p174_p10), %s2182_s3, %s1585_s30 }
  0x14   : > { %s1302_s7 = sshll.u32 (!%p174_p10), %s1299_s6, 4  ;;  %s1285_s8 = scalar_lea.sflag (!%p174_p10), [#allocation5], %s198_s27  ;;  %s1303_s7 = int_to_ptr.hbm [resolvable:$true] %s1302_s7 }
  0x15   : > { %s1664_s9 = sshra.s32 (!%p174_p10), %s1303_s7, 4  ;;  %s1665_s9 = int_to_ptr.hbm [resolvable:$true] %s1664_s9 }
  0x16   : > { %v247_v0 = vld [vmem:[%s2181_s2 + $0x8] sm:$0xf]  ;;  %vm345_vm0 = vcmask 1043456   ;;  %v246_v2 = vld [vmem:[%s2181_s2] sm:$0xff]  ;;  %v1479_v4 = vld [vmem:[%s2181_s2 + $0x18] sm:$0xf]  ;;  %v1982_v42 = vstv %s1218_s24  ;;  %p1671_p1 = scmp.lt.s32.totalorder %s1665_s9, %s2182_s3 }
  0x17   : > { %v1546_v1 = vld [vmem:[%s2181_s2 + $0x28] sm:$0xf]  ;;  %1586 = vmatpush.msk.msra.mxu3 %vm345_vm0, %v247_v0  ;;  %v1545_v3 = vld [vmem:[%s2181_s2 + $0x20] sm:$0xff]  ;;  %1413 = vmatpush.msk.msra.mxu0 %vm345_vm0, %v247_v0  ;;  %v1478_v5 = vld [vmem:[%s2181_s2 + $0x10] sm:$0xff]  ;;  %s202_s12 = scalar_select %p201_p11, %s1720_s17, 1  ;;  %vm248_vm1 = vcmask 97280  }
  0x18   : > { %1547 = vmatpush.msk.msra.mxu2 %vm345_vm0, %v1546_v1  ;;  %1480 = vmatpush.msk.msra.mxu1 %vm345_vm0, %v1479_v4  ;;  %s1300_s17 = sshll.u32 %s1986_s29, 4  ;;  %s1666_s10 = scalar_lea.hbm %s1665_s9, 256  ;;  %s1301_s17 = int_to_ptr.vmem [resolvable:$true] %s1300_s17 }
  0x19   : > { %1587 = vmatpush.msra.mxu3 %v246_v2  ;;  %364 = vmatpush.msra.mxu0 %v246_v2  ;;  %s1592_s13 = smul.u32 288, %s202_s12  ;;  %p1667_p12 = scmp.ne.s32.totalorder %s1665_s9, %s1666_s10 }
  0x1a   : > { %992 = vmatpush.msra.mxu2 %v1545_v3  ;;  %646 = vmatpush.msra.mxu1 %v1478_v5 }
  0x1b   : > { %1588 = vmatpush.msk.msrb.mxu3 %vm345_vm0, %v1479_v4  ;;  %s1838_s22 = scalar_lea.vmem %s2180_s1, %s1592_s13  ;;  %p1668_p13 = pnand %p1667_p12, %p1795_p4 }
  0x1c   : > { %v1841_v6 = vld [vmem:[%s1838_s22 + $0xc0] sm:$0xff]  ;;  %v1446_v9 = vld [vmem:[%s1838_s22 + $0x10] sm:$0xff]  ;;  %v1853_v10 = vld [vmem:[%s1838_s22 + $0xc8] sm:$0xff]  ;;  %s1670_s13 = scalar_lea.hbm %s2182_s3, 512 }
  0x1d   : > { %1589 = vmatpush.msrb.mxu3 %v1478_v5  ;;  %v1513_v7 = vld [vmem:[%s1838_s22 + $0x20] sm:$0xff]  ;;  %1481 = vmatmul.msk.f32.vlgmr.msra.gmra.mxu1 %vm248_vm1, %v1446_v9  ;;  %v1514_v11 = vld [vmem:[%s1838_s22 + $0x28] sm:$0xff]  ;;  %v1447_v13 = vld [vmem:[%s1838_s22 + $0x18] sm:$0xff]  ;;  %p1669_p0 = pneg %p1668_p13  ;;  %p1672_p2 = scmp.lt.s32.totalorder %s1670_s13, %s1666_s10 }
  0x1e   : > { %v214_v8 = vld [vmem:[%s1838_s22] sm:$0xff]  ;;  %1438 = vmatmul.msk.f32.vlgmr.msra.gmra.mxu3 %vm248_vm1, %v1841_v6  ;;  %1548 = vmatmul.msk.f32.vlgmr.msra.gmra.mxu2 %vm248_vm1, %v1513_v7  ;;  %v215_v12 = vld [vmem:[%s1838_s22 + $0x8] sm:$0xff]  ;;  %v1864_v14 = vld [vmem:[%s1838_s22 + $0xd0] sm:$0xff] }
  0x1f   : > { %1414 = vmatmul.msk.f32.vlgmr.msra.gmra.mxu0 %vm248_vm1, %v214_v8  ;;  %1590 = vmatpush.msk.msra.mxu3 %vm345_vm0, %v1546_v1  ;;  %v1515_v15 = vld [vmem:[%s1838_s22 + $0x30] sm:$0xff]  ;;  %v1873_v16 = vld [vmem:[%s1838_s22 + $0xd8] sm:$0xff]  ;;  %v1882_v18 = vld [vmem:[%s1838_s22 + $0xe0] sm:$0xff]  ;;  %p1673_p3 = por %p1672_p2, %p1671_p1 }
  0x20   : > { %v1516_v17 = vld [vmem:[%s1838_s22 + $0x38] sm:$0xff]  ;;  %v1517_v19 = vld [vmem:[%s1838_s22 + $0x40] sm:$0xff]  ;;  %v1891_v20 = vld [vmem:[%s1838_s22 + $0xe8] sm:$0xff] }
  0x21   : > { %1591 = vmatpush.msra.mxu3 %v1545_v3  ;;  %v1518_v21 = vld [vmem:[%s1838_s22 + $0x48] sm:$0xff]  ;;  %v1900_v22 = vld [vmem:[%s1838_s22 + $0xf0] sm:$0xff]  ;;  %v1909_v24 = vld [vmem:[%s1838_s22 + $0xf8] sm:$0xff]  ;;  %p1674_p5 = pnand %p1673_p3, %p1669_p0 }
  0x22   : > { %v1519_v23 = vld [vmem:[%s1838_s22 + $0x50] sm:$0xff]  ;;  %v1520_v25 = vld [vmem:[%s1838_s22 + $0x58] sm:$0xff]  ;;  %v1521_v26 = vld [vmem:[%s1838_s22 + $0x60] sm:$0xff] }
  0x23   : > { %v1522_v27 = vld [vmem:[%s1838_s22 + $0x68] sm:$0xff]  ;;  %v1523_v28 = vld [vmem:[%s1838_s22 + $0x70] sm:$0xff]  ;;  %v1524_v29 = vld [vmem:[%s1838_s22 + $0x78] sm:$0xff] }
  0x24   : > { %v1525_v30 = vld [vmem:[%s1838_s22 + $0x80] sm:$0xff]  ;;  %v1526_v31 = vld [vmem:[%s1838_s22 + $0x88] sm:$0xff]  ;;  %v1527_v33 = vld [vmem:[%s1838_s22 + $0x90] sm:$0xff] }
  0x25   : > { %1482 = vmatmul.msk.f32.gmra.mxu1 %vm248_vm1, %v1447_v13  ;;  %v1954_v32 = vld [vmem:[%s1838_s22 + $0x100] sm:$0xff]  ;;  %v1963_v34 = vld [vmem:[%s1838_s22 + $0x108] sm:$0xff]  ;;  %v1528_v35 = vld [vmem:[%s1838_s22 + $0x98] sm:$0xff] }
  0x26   : > { %1439 = vmatmul.msk.f32.gmra.mxu3 %vm248_vm1, %v1853_v10  ;;  %1549 = vmatmul.msk.f32.gmra.mxu2 %vm248_vm1, %v1514_v11  ;;  %v1529_v36 = vld [vmem:[%s1838_s22 + $0xa0] sm:$0xff]  ;;  %v1530_v44 = vld [vmem:[%s1838_s22 + $0xa8] sm:$0xff]  ;;  %v1531_v52 = vld [vmem:[%s1838_s22 + $0xb0] sm:$0xff] }
  0x27   : > { %1415 = vmatmul.msk.f32.gmra.mxu0 %vm248_vm1, %v215_v12  ;;  %v1532_v60 = vld [vmem:[%s1838_s22 + $0xb8] sm:$0xff] }
  0x2d   : > { %1483 = vmatmul.msk.f32.gmra.mxu1 %vm248_vm1, %v1513_v7 }
  0x2e   : > { %1440 = vmatmul.msk.f32.gmra.mxu3 %vm248_vm1, %v1864_v14  ;;  %1550 = vmatmul.msk.f32.gmra.mxu2 %vm248_vm1, %v1515_v15 }
  0x2f   : > { %1416 = vmatmul.msk.f32.gmra.mxu0 %vm248_vm1, %v1446_v9 }
  0x35   : > { %1484 = vmatmul.msk.f32.gmra.mxu1 %vm248_vm1, %v1514_v11 }
  0x36   : > { %1441 = vmatmul.msk.f32.gmra.mxu3 %vm248_vm1, %v1873_v16  ;;  %1551 = vmatmul.msk.f32.gmra.mxu2 %vm248_vm1, %v1516_v17 }
  0x37   : > { %1417 = vmatmul.msk.f32.gmra.mxu0 %vm248_vm1, %v1447_v13 }
  0x3d   : > { %1485 = vmatmul.msk.f32.gmra.mxu1 %vm248_vm1, %v1515_v15 }
  0x3e   : > { %1442 = vmatmul.msk.f32.gmra.mxu3 %vm248_vm1, %v1882_v18  ;;  %1552 = vmatmul.msk.f32.gmra.mxu2 %vm248_vm1, %v1517_v19 }
  0x3f   : > { %1418 = vmatmul.msk.f32.gmra.mxu0 %vm248_vm1, %v1513_v7 }
  0x45   : > { %1486 = vmatmul.msk.f32.gmra.mxu1 %vm248_vm1, %v1516_v17 }
  0x46   : > { %1443 = vmatmul.msk.f32.gmra.mxu3 %vm248_vm1, %v1891_v20  ;;  %1553 = vmatmul.msk.f32.gmra.mxu2 %vm248_vm1, %v1518_v21 }
  0x47   : > { %1419 = vmatmul.msk.f32.gmra.mxu0 %vm248_vm1, %v1514_v11 }
  0x4d   : > { %1487 = vmatmul.msk.f32.gmra.mxu1 %vm248_vm1, %v1517_v19 }
  0x4e   : > { %1444 = vmatmul.msk.f32.gmra.mxu3 %vm248_vm1, %v1900_v22  ;;  %1554 = vmatmul.msk.f32.gmra.mxu2 %vm248_vm1, %v1519_v23 }
  0x4f   : > { %1420 = vmatmul.msk.f32.gmra.mxu0 %vm248_vm1, %v1515_v15 }
  0x55   : > { %1488 = vmatmul.msk.f32.gmra.mxu1 %vm248_vm1, %v1518_v21 }
  0x56   : > { %1445 = vmatmul.msk.f32.gmra.mxu3 %vm248_vm1, %v1909_v24  ;;  %1555 = vmatmul.msk.f32.gmra.mxu2 %vm248_vm1, %v1520_v25 }
  0x57   : > { %1421 = vmatmul.msk.f32.gmra.mxu0 %vm248_vm1, %v1516_v17 }
  0x5d   : > { %1489 = vmatmul.msk.f32.gmra.mxu1 %vm248_vm1, %v1519_v23 }
  0x5e   : > { %1505 = vmatmul.msk.f32.vlgmr.msrb.gmra.mxu3 %vm248_vm1, %v1864_v14  ;;  %1556 = vmatmul.msk.f32.gmra.mxu2 %vm248_vm1, %v1521_v26 }
  0x5f   : > { %1422 = vmatmul.msk.f32.gmra.mxu0 %vm248_vm1, %v1517_v19 }
  0x65   : > { %1490 = vmatmul.msk.f32.gmra.mxu1 %vm248_vm1, %v1520_v25 }
  0x66   : > { %1506 = vmatmul.msk.f32.gmra.mxu3 %vm248_vm1, %v1873_v16  ;;  %1557 = vmatmul.msk.f32.gmra.mxu2 %vm248_vm1, %v1522_v27 }
  0x67   : > { %1423 = vmatmul.msk.f32.gmra.mxu0 %vm248_vm1, %v1518_v21 }
  0x6d   : > { %1491 = vmatmul.msk.f32.gmra.mxu1 %vm248_vm1, %v1521_v26 }
  0x6e   : > { %1507 = vmatmul.msk.f32.gmra.mxu3 %vm248_vm1, %v1882_v18  ;;  %1558 = vmatmul.msk.f32.gmra.mxu2 %vm248_vm1, %v1523_v28 }
  0x6f   : > { %1424 = vmatmul.msk.f32.gmra.mxu0 %vm248_vm1, %v1519_v23 }
  0x75   : > { %1492 = vmatmul.msk.f32.gmra.mxu1 %vm248_vm1, %v1522_v27 }
  0x76   : > { %1508 = vmatmul.msk.f32.gmra.mxu3 %vm248_vm1, %v1891_v20  ;;  %1559 = vmatmul.msk.f32.gmra.mxu2 %vm248_vm1, %v1524_v29 }
  0x77   : > { %1425 = vmatmul.msk.f32.gmra.mxu0 %vm248_vm1, %v1520_v25 }
  0x7d   : > { %1493 = vmatmul.msk.f32.gmra.mxu1 %vm248_vm1, %v1523_v28 }
  0x7e   : > { %1509 = vmatmul.msk.f32.gmra.mxu3 %vm248_vm1, %v1900_v22  ;;  %1560 = vmatmul.msk.f32.gmra.mxu2 %vm248_vm1, %v1525_v30 }
  0x7f   : > { %1426 = vmatmul.msk.f32.gmra.mxu0 %vm248_vm1, %v1521_v26 }
  0x85   : > { %1494 = vmatmul.msk.f32.gmra.mxu1 %vm248_vm1, %v1524_v29 }
  0x86   : > { %1510 = vmatmul.msk.f32.gmra.mxu3 %vm248_vm1, %v1909_v24  ;;  %1561 = vmatmul.msk.f32.gmra.mxu2 %vm248_vm1, %v1526_v31 }
  0x87   : > { %1427 = vmatmul.msk.f32.gmra.mxu0 %vm248_vm1, %v1522_v27 }
  0x8d   : > { %1495 = vmatmul.msk.f32.gmra.mxu1 %vm248_vm1, %v1525_v30 }
  0x8e   : > { %1511 = vmatmul.msk.f32.gmra.mxu3 %vm248_vm1, %v1954_v32  ;;  %1562 = vmatmul.msk.f32.gmra.mxu2 %vm248_vm1, %v1527_v33 }
  0x8f   : > { %1428 = vmatmul.msk.f32.gmra.mxu0 %vm248_vm1, %v1523_v28 }
  0x95   : > { %1496 = vmatmul.msk.f32.gmra.mxu1 %vm248_vm1, %v1526_v31 }
  0x96   : > { %1512 = vmatmul.msk.f32.gmra.mxu3 %vm248_vm1, %v1963_v34  ;;  %1563 = vmatmul.msk.f32.gmra.mxu2 %vm248_vm1, %v1528_v35 }
  0x97   : > { %1429 = vmatmul.msk.f32.gmra.mxu0 %vm248_vm1, %v1524_v29 }
  0x9a   : > { %v648_v38 = vpop.f32.mrf.mxu1 }
  0x9c   : > { %v366_v37 = vpop.f32.mrf.mxu0 }
  0x9d   : > { %v776_v39 = vadd.f32 %v648_v38, %v366_v37  ;;  %1497 = vmatmul.msk.f32.gmra.mxu1 %vm248_vm1, %v1527_v33 }
  0x9e   : > { %1564 = vmatmul.msk.f32.gmra.mxu2 %vm248_vm1, %v1529_v36  ;;  %1572 = vmatmul.msk.f32.vlgmr.msra.gmra.mxu3 %vm248_vm1, %v1882_v18 }
  0x9f   : > { %1430 = vmatmul.msk.f32.gmra.mxu0 %vm248_vm1, %v1525_v30  ;;  %v1544_v30 = vld [vmem:[%s1838_s22 + $0x118] sm:$0xff] }
  0xa1   : > { %v1980_v40 = vpop.f32.mrf.mxu3  ;;  %v994_v41 = vpop.f32.mrf.mxu2 }
  0xa2   : > { %v1122_v43 = vadd.f32 %v994_v41, %v776_v39  ;;  %v651_v47 = vpop.f32.mrf.mxu1 }
  0xa4   : > { %v1220_v45 = vmul.f32 %v1982_v42, %v1122_v43  ;;  %v369_v46 = vpop.f32.mrf.mxu0 }
  0xa5   : > { %v777_v48 = vadd.f32 %v651_v47, %v369_v46  ;;  %1498 = vmatmul.msk.f32.gmra.mxu1 %vm248_vm1, %v1528_v35 }
  0xa6   : > { %1252 = vst [vmem:[%s1986_s29] sm:$0xff] %v1220_v45  ;;  %1565 = vmatmul.msk.f32.gmra.mxu2 %vm248_vm1, %v1530_v44  ;;  %1573 = vmatmul.msk.f32.gmra.mxu3 %vm248_vm1, %v1891_v20 }
  0xa7   : > { %1431 = vmatmul.msk.f32.gmra.mxu0 %vm248_vm1, %v1526_v31 }
  0xa9   : > { %v1994_v49 = vpop.f32.mrf.mxu3  ;;  %v997_v50 = vpop.f32.mrf.mxu2 }
  0xaa   : > { %v1123_v51 = vadd.f32 %v997_v50, %v777_v48  ;;  %v654_v55 = vpop.f32.mrf.mxu1 }
  0xac   : > { %v1221_v53 = vmul.f32 %v1982_v42, %v1123_v51  ;;  %v372_v54 = vpop.f32.mrf.mxu0 }
  0xad   : > { %v778_v56 = vadd.f32 %v654_v55, %v372_v54  ;;  %1499 = vmatmul.msk.f32.gmra.mxu1 %vm248_vm1, %v1529_v36 }
  0xae   : > { %1253 = vst [vmem:[%s1986_s29 + $0x8] sm:$0xff] %v1221_v53  ;;  %1566 = vmatmul.msk.f32.gmra.mxu2 %vm248_vm1, %v1531_v52  ;;  %1574 = vmatmul.msk.f32.gmra.mxu3 %vm248_vm1, %v1900_v22  ;;  %v1543_v22 = vld [vmem:[%s1838_s22 + $0x110] sm:$0xff] }
  0xaf   : > { %1432 = vmatmul.msk.f32.gmra.mxu0 %vm248_vm1, %v1527_v33 }
  0xb1   : > { %v2004_v57 = vpop.f32.mrf.mxu3  ;;  %v1000_v58 = vpop.f32.mrf.mxu2 }
  0xb2   : > { %v1124_v59 = vadd.f32 %v1000_v58, %v778_v56  ;;  %v657_v63 = vpop.f32.mrf.mxu1 }
  0xb4   : > { %v1222_v61 = vmul.f32 %v1982_v42, %v1124_v59  ;;  %v375_v62 = vpop.f32.mrf.mxu0 }
  0xb5   : > { %v779_v0 = vadd.f32 %v657_v63, %v375_v62  ;;  %1500 = vmatmul.msk.f32.gmra.mxu1 %vm248_vm1, %v1530_v44 }
  0xb6   : > { %1254 = vst [vmem:[%s1986_s29 + $0x10] sm:$0xff] %v1222_v61  ;;  %1567 = vmatmul.msk.f32.gmra.mxu2 %vm248_vm1, %v1532_v60  ;;  %1575 = vmatmul.msk.f32.gmra.mxu3 %vm248_vm1, %v1909_v24 }
  0xb7   : > { %1433 = vmatmul.msk.f32.gmra.mxu0 %vm248_vm1, %v1528_v35 }
  0xb9   : > { %v2014_v1 = vpop.f32.mrf.mxu3  ;;  %v1003_v2 = vpop.f32.mrf.mxu2 }
  0xba   : > { %v1125_v3 = vadd.f32 %v1003_v2, %v779_v0  ;;  %v660_v7 = vpop.f32.mrf.mxu1 }
  0xbc   : > { %v1223_v4 = vmul.f32 %v1982_v42, %v1125_v3  ;;  %v378_v5 = vpop.f32.mrf.mxu0 }
  0xbd   : > { %v780_v8 = vadd.f32 %v660_v7, %v378_v5  ;;  %1501 = vmatmul.msk.f32.gmra.mxu1 %vm248_vm1, %v1531_v52 }
  0xbe   : > { %1255 = vst [vmem:[%s1986_s29 + $0x18] sm:$0xff] %v1223_v4  ;;  %1568 = vmatmul.msk.f32.gmra.mxu2 %vm248_vm1, %v1841_v6  ;;  %1576 = vmatmul.msk.f32.gmra.mxu3 %vm248_vm1, %v1954_v32 }
  0xbf   : > { %1434 = vmatmul.msk.f32.gmra.mxu0 %vm248_vm1, %v1529_v36 }
  0xc1   : > { %v2024_v9 = vpop.f32.mrf.mxu3  ;;  %v1006_v11 = vpop.f32.mrf.mxu2 }
  0xc2   : > { %v1126_v12 = vadd.f32 %v1006_v11, %v780_v8  ;;  %v663_v17 = vpop.f32.mrf.mxu1 }
  0xc4   : > { %v1224_v13 = vmul.f32 %v1982_v42, %v1126_v12  ;;  %v381_v15 = vpop.f32.mrf.mxu0 }
  0xc5   : > { %v781_v18 = vadd.f32 %v663_v17, %v381_v15  ;;  %1502 = vmatmul.msk.f32.gmra.mxu1 %vm248_vm1, %v1532_v60 }
  0xc6   : > { %1256 = vst [vmem:[%s1986_s29 + $0x20] sm:$0xff] %v1224_v13  ;;  %1569 = vmatmul.msk.f32.gmra.mxu2 %vm248_vm1, %v1853_v10  ;;  %1577 = vmatmul.msk.f32.gmra.mxu3 %vm248_vm1, %v1963_v34 }
  0xc7   : > { %1435 = vmatmul.msk.f32.gmra.mxu0 %vm248_vm1, %v1530_v44 }
  0xc9   : > { %v2034_v19 = vpop.f32.mrf.mxu3  ;;  %v1009_v20 = vpop.f32.mrf.mxu2 }
  0xca   : > { %v1127_v21 = vadd.f32 %v1009_v20, %v781_v18  ;;  %v666_v25 = vpop.f32.mrf.mxu1 }
  0xcc   : > { %v1225_v23 = vmul.f32 %v1982_v42, %v1127_v21  ;;  %v384_v24 = vpop.f32.mrf.mxu0 }
  0xcd   : > { %v782_v26 = vadd.f32 %v666_v25, %v384_v24  ;;  %1503 = vmatmul.msk.f32.gmra.mxu1 %vm248_vm1, %v1841_v6 }
  0xce   : > { %1257 = vst [vmem:[%s1986_s29 + $0x28] sm:$0xff] %v1225_v23  ;;  %1570 = vmatmul.msk.f32.gmra.mxu2 %vm248_vm1, %v1864_v14  ;;  %1578 = vmatmul.msk.f32.gmra.mxu3 %vm248_vm1, %v1543_v22 }
  0xcf   : > { %1436 = vmatmul.msk.f32.gmra.mxu0 %vm248_vm1, %v1531_v52 }
  0xd1   : > { %v2045_v27 = vpop.f32.mrf.mxu3  ;;  %v1012_v28 = vpop.f32.mrf.mxu2 }
  0xd2   : > { %v1128_v29 = vadd.f32 %v1012_v28, %v782_v26  ;;  %v669_v33 = vpop.f32.mrf.mxu1 }
  0xd4   : > { %v1226_v31 = vmul.f32 %v1982_v42, %v1128_v29  ;;  %v387_v32 = vpop.f32.mrf.mxu0 }
  0xd5   : > { %v783_v14 = vadd.f32 %v669_v33, %v387_v32  ;;  %1504 = vmatmul.msk.f32.gmra.mxu1 %vm248_vm1, %v1853_v10 }
  0xd6   : > { %1258 = vst [vmem:[%s1986_s29 + $0x30] sm:$0xff] %v1226_v31  ;;  %1571 = vmatmul.msk.f32.gmra.mxu2 %vm248_vm1, %v1873_v16  ;;  %1579 = vmatmul.msk.f32.gmra.mxu3 %vm248_vm1, %v1544_v30 }
  0xd7   : > { %1437 = vmatmul.msk.f32.gmra.mxu0 %vm248_vm1, %v1532_v60 }
  0xd9   : > { %v2056_v6 = vpop.f32.mrf.mxu3  ;;  %v1015_v34 = vpop.f32.mrf.mxu2 }
  0xda   : > { %v1129_v35 = vadd.f32 %v1015_v34, %v783_v14  ;;  %v672_v38 = vpop.f32.mrf.mxu1 }
  0xdc   : > { %v1227_v36 = vmul.f32 %v1982_v42, %v1129_v35  ;;  %v390_v37 = vpop.f32.mrf.mxu0 }
  0xdd   : > { %v784_v16 = vadd.f32 %v672_v38, %v390_v37 }
  0xde   : > { %1259 = vst [vmem:[%s1986_s29 + $0x38] sm:$0xff] %v1227_v36 }
  0xe1   : > { %v2060_v39 = vpop.f32.mrf.mxu3  ;;  %v1018_v41 = vpop.f32.mrf.mxu2 }
  0xe2   : > { %v1130_v43 = vadd.f32 %v1018_v41, %v784_v16  ;;  %v675_v46 = vpop.f32.mrf.mxu1 }
  0xe4   : > { %v1228_v44 = vmul.f32 %v1982_v42, %v1130_v43  ;;  %v393_v45 = vpop.f32.mrf.mxu0  ;;  %v800_v43 = vadd.f32 %v2060_v39, %v1980_v40 }
  0xe5   : > { %v785_v10 = vadd.f32 %v675_v46, %v393_v45 }
  0xe6   : > { %1260 = vst [vmem:[%s1986_s29 + $0x40] sm:$0xff] %v1228_v44 }
  0xe9   : > { %v2064_v47 = vpop.f32.mrf.mxu3  ;;  %v1021_v48 = vpop.f32.mrf.mxu2 }
  0xea   : > { %v1131_v50 = vadd.f32 %v1021_v48, %v785_v10  ;;  %v678_v53 = vpop.f32.mrf.mxu1 }
  0xec   : > { %v1229_v51 = vmul.f32 %v1982_v42, %v1131_v50  ;;  %v396_v52 = vpop.f32.mrf.mxu0 }
  0xed   : > { %v786_v54 = vadd.f32 %v678_v53, %v396_v52 }
  0xee   : > { %1261 = vst [vmem:[%s1986_s29 + $0x48] sm:$0xff] %v1229_v51 }
  0xf1   : > { %v2068_v55 = vpop.f32.mrf.mxu3  ;;  %v1024_v56 = vpop.f32.mrf.mxu2 }
  0xf2   : > { %v1132_v58 = vadd.f32 %v1024_v56, %v786_v54  ;;  %v681_v61 = vpop.f32.mrf.mxu1  ;;  %v801_v54 = vadd.f32 %v2064_v47, %v1994_v49 }
  0xf4   : > { %v1230_v59 = vmul.f32 %v1982_v42, %v1132_v58  ;;  %v399_v60 = vpop.f32.mrf.mxu0 }
  0xf5   : > { %v787_v62 = vadd.f32 %v681_v61, %v399_v60 }
  0xf6   : > { %1262 = vst [vmem:[%s1986_s29 + $0x50] sm:$0xff] %v1230_v59 }
  0xf9   : > { %v2072_v63 = vpop.f32.mrf.mxu3  ;;  %v1027_v0 = vpop.f32.mrf.mxu2 }
  0xfa   : > { %v1133_v2 = vadd.f32 %v1027_v0, %v787_v62  ;;  %v684_v5 = vpop.f32.mrf.mxu1 }
  0xfc   : > { %v1231_v3 = vmul.f32 %v1982_v42, %v1133_v2  ;;  %v402_v4 = vpop.f32.mrf.mxu0  ;;  %v802_v2 = vadd.f32 %v2068_v55, %v2004_v57 }
  0xfd   : > { %v788_v7 = vadd.f32 %v684_v5, %v402_v4 }
  0xfe   : > { %1263 = vst [vmem:[%s1986_s29 + $0x58] sm:$0xff] %v1231_v3 }
 0x101   : > { %v2076_v8 = vpop.f32.mrf.mxu3  ;;  %v1030_v11 = vpop.f32.mrf.mxu2 }
 0x102   : > { %v1134_v12 = vadd.f32 %v1030_v11, %v788_v7  ;;  %v687_v17 = vpop.f32.mrf.mxu1 }
 0x104   : > { %v1232_v13 = vmul.f32 %v1982_v42, %v1134_v12  ;;  %v405_v15 = vpop.f32.mrf.mxu0 }
 0x105   : > { %v789_v18 = vadd.f32 %v687_v17, %v405_v15  ;;  %v803_v15 = vadd.f32 %v2072_v63, %v2014_v1 }
 0x106   : > { %1264 = vst [vmem:[%s1986_s29 + $0x60] sm:$0xff] %v1232_v13 }
 0x109   : > { %v2080_v20 = vpop.f32.mrf.mxu3  ;;  %v1033_v21 = vpop.f32.mrf.mxu2 }
 0x10a   : > { %v1135_v22 = vadd.f32 %v1033_v21, %v789_v18  ;;  %v690_v25 = vpop.f32.mrf.mxu1 }
 0x10c   : > { %v1233_v23 = vmul.f32 %v1982_v42, %v1135_v22  ;;  %v408_v24 = vpop.f32.mrf.mxu0 }
 0x10d   : > { %v790_v26 = vadd.f32 %v690_v25, %v408_v24 }
 0x10e   : > { %1265 = vst [vmem:[%s1986_s29 + $0x68] sm:$0xff] %v1233_v23 }
 0x111   : > { %v2084_v28 = vpop.f32.mrf.mxu3  ;;  %v1036_v29 = vpop.f32.mrf.mxu2 }
 0x112   : > { %v1136_v30 = vadd.f32 %v1036_v29, %v790_v26  ;;  %v693_v33 = vpop.f32.mrf.mxu1  ;;  %v804_v26 = vadd.f32 %v2076_v8, %v2024_v9 }
 0x114   : > { %v1234_v31 = vmul.f32 %v1982_v42, %v1136_v30  ;;  %v411_v32 = vpop.f32.mrf.mxu0 }
 0x115   : > { %v791_v14 = vadd.f32 %v693_v33, %v411_v32 }
 0x116   : > { %1266 = vst [vmem:[%s1986_s29 + $0x70] sm:$0xff] %v1234_v31 }
 0x119   : > { %v2088_v34 = vpop.f32.mrf.mxu3  ;;  %v1039_v35 = vpop.f32.mrf.mxu2 }
 0x11a   : > { %v1137_v36 = vadd.f32 %v1039_v35, %v791_v14  ;;  %v696_v16 = vpop.f32.mrf.mxu1 }
 0x11c   : > { %v1235_v37 = vmul.f32 %v1982_v42, %v1137_v36  ;;  %v414_v38 = vpop.f32.mrf.mxu0  ;;  %v805_v36 = vadd.f32 %v2080_v20, %v2034_v19 }
 0x11d   : > { %v792_v41 = vadd.f32 %v696_v16, %v414_v38 }
 0x11e   : > { %1267 = vst [vmem:[%s1986_s29 + $0x78] sm:$0xff] %v1235_v37 }
 0x121   : > { %v1042_v44 = vpop.f32.mrf.mxu2  ;;  %v1066_v45 = vpop.f32.mrf.mxu3 }
 0x122   : > { %v1138_v46 = vadd.f32 %v1042_v44, %v792_v41  ;;  %v1146_v10 = vadd.f32 %v1066_v45, %v800_v43  ;;  %v699_v52 = vpop.f32.mrf.mxu1 }
 0x124   : > { %v1236_v48 = vmul.f32 %v1982_v42, %v1138_v46  ;;  %v1244_v50 = vmul.f32 %v1982_v42, %v1146_v10  ;;  %v417_v51 = vpop.f32.mrf.mxu0  ;;  %v806_v46 = vadd.f32 %v2084_v28, %v2045_v27  ;;  %v807_v27 = vadd.f32 %v2088_v34, %v2056_v6 }
 0x125   : > { %v793_v53 = vadd.f32 %v699_v52, %v417_v51 }
 0x126   : > { %1268 = vst [vmem:[%s1986_s29 + $0x80] sm:$0xff] %v1236_v48 }
 0x127   : > { %1276 = vst [vmem:[%s1986_s29 + $0xc0] sm:$0xff] %v1244_v50 }
 0x129   : > { %v1045_v56 = vpop.f32.mrf.mxu2  ;;  %v1069_v40 = vpop.f32.mrf.mxu3 }
 0x12a   : > { %v1139_v39 = vadd.f32 %v1045_v56, %v793_v53  ;;  %v1147_v58 = vadd.f32 %v1069_v40, %v801_v54  ;;  %v702_v62 = vpop.f32.mrf.mxu1 }
 0x12c   : > { %v1237_v59 = vmul.f32 %v1982_v42, %v1139_v39  ;;  %v1245_v60 = vmul.f32 %v1982_v42, %v1147_v58  ;;  %v420_v61 = vpop.f32.mrf.mxu0 }
 0x12d   : > { %v794_v0 = vadd.f32 %v702_v62, %v420_v61 }
 0x12e   : > { %1269 = vst [vmem:[%s1986_s29 + $0x88] sm:$0xff] %v1237_v59 }
 0x12f   : > { %1277 = vst [vmem:[%s1986_s29 + $0xc8] sm:$0xff] %v1245_v60 }
 0x131   : > { %v1048_v3 = vpop.f32.mrf.mxu2  ;;  %v1072_v49 = vpop.f32.mrf.mxu3 }
 0x132   : > { %v1140_v47 = vadd.f32 %v1048_v3, %v794_v0  ;;  %v1148_v4 = vadd.f32 %v1072_v49, %v802_v2  ;;  %v705_v12 = vpop.f32.mrf.mxu1 }
 0x134   : > { %v1238_v5 = vmul.f32 %v1982_v42, %v1140_v47  ;;  %v1246_v7 = vmul.f32 %v1982_v42, %v1148_v4  ;;  %v423_v11 = vpop.f32.mrf.mxu0 }
 0x135   : > { %v795_v13 = vadd.f32 %v705_v12, %v423_v11 }
 0x136   : > { %1270 = vst [vmem:[%s1986_s29 + $0x90] sm:$0xff] %v1238_v5 }
 0x137   : > { %1278 = vst [vmem:[%s1986_s29 + $0xd0] sm:$0xff] %v1246_v7 }
 0x139   : > { %v1051_v17 = vpop.f32.mrf.mxu2  ;;  %v1075_v57 = vpop.f32.mrf.mxu3 }
 0x13a   : > { %v1141_v55 = vadd.f32 %v1051_v17, %v795_v13  ;;  %v1149_v18 = vadd.f32 %v1075_v57, %v803_v15  ;;  %v708_v24 = vpop.f32.mrf.mxu1 }
 0x13c   : > { %v1239_v21 = vmul.f32 %v1982_v42, %v1141_v55  ;;  %v1247_v22 = vmul.f32 %v1982_v42, %v1149_v18  ;;  %v426_v23 = vpop.f32.mrf.mxu0 }
 0x13d   : > { %v796_v25 = vadd.f32 %v708_v24, %v426_v23 }
 0x13e   : > { %1271 = vst [vmem:[%s1986_s29 + $0x98] sm:$0xff] %v1239_v21 }
 0x13f   : > { %1279 = vst [vmem:[%s1986_s29 + $0xd8] sm:$0xff] %v1247_v22 }
 0x141   : > { %v1054_v29 = vpop.f32.mrf.mxu2  ;;  %v1078_v1 = vpop.f32.mrf.mxu3 }
 0x142   : > { %v1142_v63 = vadd.f32 %v1054_v29, %v796_v25  ;;  %v1150_v30 = vadd.f32 %v1078_v1, %v804_v26  ;;  %v711_v14 = vpop.f32.mrf.mxu1 }
 0x144   : > { %v1240_v31 = vmul.f32 %v1982_v42, %v1142_v63  ;;  %v1248_v32 = vmul.f32 %v1982_v42, %v1150_v30  ;;  %v429_v33 = vpop.f32.mrf.mxu0 }
 0x145   : > { %v797_v35 = vadd.f32 %v711_v14, %v429_v33 }
 0x146   : > { %1272 = vst [vmem:[%s1986_s29 + $0xa0] sm:$0xff] %v1240_v31 }
 0x147   : > { %1280 = vst [vmem:[%s1986_s29 + $0xe0] sm:$0xff] %v1248_v32 }
 0x149   : > { %v1057_v37 = vpop.f32.mrf.mxu2  ;;  %v1081_v9 = vpop.f32.mrf.mxu3 }
 0x14a   : > { %v1143_v8 = vadd.f32 %v1057_v37, %v797_v35  ;;  %v1151_v38 = vadd.f32 %v1081_v9, %v805_v36  ;;  %v714_v44 = vpop.f32.mrf.mxu1 }
 0x14c   : > { %v1241_v16 = vmul.f32 %v1982_v42, %v1143_v8  ;;  %v1249_v41 = vmul.f32 %v1982_v42, %v1151_v38  ;;  %v432_v43 = vpop.f32.mrf.mxu0 }
 0x14d   : > { %v798_v45 = vadd.f32 %v714_v44, %v432_v43 }
 0x14e   : > { %1273 = vst [vmem:[%s1986_s29 + $0xa8] sm:$0xff] %v1241_v16 }
 0x14f   : > { %1281 = vst [vmem:[%s1986_s29 + $0xe8] sm:$0xff] %v1249_v41 }
 0x151   : > { %v1060_v19 = vpop.f32.mrf.mxu2  ;;  %v1084_v20 = vpop.f32.mrf.mxu3 }
 0x152   : > { %v1144_v10 = vadd.f32 %v1060_v19, %v798_v45  ;;  %v1152_v48 = vadd.f32 %v1084_v20, %v806_v46  ;;  %v717_v53 = vpop.f32.mrf.mxu1 }
 0x154   : > { %v1242_v50 = vmul.f32 %v1982_v42, %v1144_v10  ;;  %v1250_v51 = vmul.f32 %v1982_v42, %v1152_v48  ;;  %v435_v52 = vpop.f32.mrf.mxu0 }
 0x155   : > { %v799_v54 = vadd.f32 %v717_v53, %v435_v52 }
 0x156   : > { %1274 = vst [vmem:[%s1986_s29 + $0xb0] sm:$0xff] %v1242_v50 }
 0x157   : > { %1282 = vst [vmem:[%s1986_s29 + $0xf0] sm:$0xff] %v1250_v51 }
 0x159   : > { %v1063_v28 = vpop.f32.mrf.mxu2  ;;  %v1087_v56 = vpop.f32.mrf.mxu3 }
 0x15a   : > { %v1145_v40 = vadd.f32 %v1063_v28, %v799_v54  ;;  %v1153_v39 = vadd.f32 %v1087_v56, %v807_v27 }
 0x15c   : > { %v1243_v58 = vmul.f32 %v1982_v42, %v1145_v40  ;;  %v1251_v59 = vmul.f32 %v1982_v42, %v1153_v39 }
 0x15e   : > { %1275 = vst [vmem:[%s1986_s29 + $0xb8] sm:$0xff] %v1243_v58 }
 0x15f   : > { %1283 = vst [vmem:[%s1986_s29 + $0xf8] sm:$0xff] %v1251_v59 }
 0x160   : > { %1677 = shalt.err (!%p1674_p5)
}
 0x161   : > { %s1730_s22 = smov 128   ;;  %s1731_s24 = smov 8  }
 0x162   : > { %1593 = dma.vmem_to_hbm [thread:$0]  (%p1795_p4), %s1301_s17, 4096, %s1303_s7, %s1285_s8, %s1730_s22, %s1730_s22, %s1731_s24  }
 0x163 PF: > { %p1599_p6 = scmp.ge.s32.totalorder %s1728_s19, 2  ;;  %s1317_s27 = sand.u32 1, %s1708_s14  }
 0x164   : > { %s1318_s28 = scalar_lea.sflag [#allocation5], %s1317_s27 }
 0x165   : > { %p1596_p7 = pnand %p1599_p6, %p1802_p8 }
 0x167   : > { %p1597_p9 = pneg %p1596_p7 }
 0x169   : > { %1703 = dma.done.wait (%p1597_p9), %s1318_s28, 4096  }
 0x16a   : > { %1705 = vsyncadd (%p1597_p9), %s1318_s28, 4294963200  ;;  %s17_s19 = sadd.s32 1, %s1728_s19   ;;  %s2185_s14 = smov %s1712_s15 }
 0x16b   : > { %p14_p10 = scmp.ge.s32.totalorder %s17_s19, 4   ;;  %s2186_s15 = smov %s1716_s16 }
 0x16c   : > { %s2187_s16 = smov %s1808_s26  ;;  %s2188_s17 = smov %s1724_s18 }
 0x16d   : > { %s2189_s18 = smov %s2191_s21  ;;  %16 = sbr.rel (!%p14_p10) target bundleno = 6 (0x6), region = 75 }
 0x172   :  { %1324 = vsyncpa [#allocation5], 1 }
 0x173   :  { %1326 = vsyncpa [#allocation5 + $0x1], 1 }

</bundles_post_ra>
